<compile_context>
chip_gen: v7x
topology: tpu7x:2x2x1
jax: 0.10.0
libtpu: 0.0.40
codegen_flags: <defaults>
</compile_context>

<pallas_src>
import functools
import math

import jax
import jax.numpy as jnp
from jax import lax
from jax.experimental import pallas as pl
from jax.experimental.pallas import tpu as pltpu


_NEG_INF = -1e30                 # finite "-inf": no NaNs on fully-masked rows
_LN_EPS = 1e-5                   # torch.nn.LayerNorm default eps
_VMEM_LIMIT = 48 * 1024 * 1024   # <= v7x 64 MiB physical; plenty of room on v5e/v6e


def _pick_tile(dim, pref, align):
    """Largest tile <= pref that divides `dim` and is a multiple of `align`;
    falls back to the full dim (always a legal block size)."""
    if dim <= pref:
        return dim
    t = (pref // align) * align
    while t >= align:
        if dim % t == 0:
            return t
        t -= align
    return dim


# ---------------------------------------------------------------------------
# Tiled linear kernel:  y = x @ W + b
# optionally fused: ReLU, and/or residual-add + LayerNorm (requires tn == N)
# ---------------------------------------------------------------------------
def _linear_kernel(*refs, activation, fuse_add_ln, eps):
    if fuse_add_ln:
        x_ref, w_ref, b_ref, r_ref, g_ref, bb_ref, o_ref, acc_ref = refs
    else:
        x_ref, w_ref, b_ref, o_ref, acc_ref = refs

    @pl.when(pl.program_id(2) == 0)
    def _init():
        acc_ref[...] = jnp.zeros_like(acc_ref)

    # bf16 MXU operands, f32 accumulation (weights are already bf16 in HBM).
    acc_ref[...] += jnp.dot(
        x_ref[...].astype(jnp.bfloat16),
        w_ref[...].astype(jnp.bfloat16),
        preferred_element_type=jnp.float32,
    )

    @pl.when(pl.program_id(2) == pl.num_programs(2) - 1)
    def _finalize():
        out = acc_ref[...] + b_ref[...].astype(jnp.float32)   # bias broadcast over rows
        if activation == "relu":
            out = jnp.maximum(out, 0.0)
        if fuse_add_ln:
            y = out + r_ref[...].astype(jnp.float32)           # residual add
            mu = jnp.mean(y, axis=-1, keepdims=True)
            d = y - mu
            var = jnp.mean(d * d, axis=-1, keepdims=True)
            out = (d * lax.rsqrt(var + eps)) * g_ref[...].astype(jnp.float32) \
                  + bb_ref[...].astype(jnp.float32)
        o_ref[...] = out.astype(o_ref.dtype)


def pallas_linear(x, w, b, *, activation=None, residual=None, gamma=None, beta=None,
                  tm=512, tn=512, tk=1024):
    """x: (M, K) f32; w: (K, N) bf16 in (in, out) layout; b: (N,) f32.
    If `residual` (+gamma/beta) is given, computes LayerNorm(x@W + b + residual)."""
    M, K = x.shape
    K2, N = w.shape
    assert K == K2 and b.shape == (N,)
    fuse_add_ln = residual is not None

    tm = _pick_tile(M, tm, 16)          # 16: bf16-safe sublane alignment
    tk = _pick_tile(K, tk, 256)         # 256-aligned K for the 2x256^2 MXU
    if fuse_add_ln:
        tn = N                          # LayerNorm reduces over the full feature dim
    else:
        tn = _pick_tile(N, tn, 256)
    grid = (M // tm, N // tn, K // tk)

    in_specs = [
        pl.BlockSpec((tm, tk), lambda i, j, k: (i, k)),
        pl.BlockSpec((tk, tn), lambda i, j, k: (k, j)),
        pl.BlockSpec((1, tn), lambda i, j, k: (0, j)),
    ]
    args = [x, w, b.reshape(1, N)]
    if fuse_add_ln:
        # residual block index is k-invariant -> fetched once per output tile
        in_specs += [
            pl.BlockSpec((tm, tn), lambda i, j, k: (i, j)),
            pl.BlockSpec((1, tn), lambda i, j, k: (0, j)),
            pl.BlockSpec((1, tn), lambda i, j, k: (0, j)),
        ]
        args += [residual, gamma.reshape(1, N), beta.reshape(1, N)]

    kernel = functools.partial(_linear_kernel, activation=activation,
                               fuse_add_ln=fuse_add_ln, eps=_LN_EPS)
    return pl.pallas_call(
        kernel,
        out_shape=jax.ShapeDtypeStruct((M, N), x.dtype),
        grid_spec=pltpu.PrefetchScalarGridSpec(
            num_scalar_prefetch=0,
            grid=grid,
            in_specs=in_specs,
            out_specs=pl.BlockSpec((tm, tn), lambda i, j, k: (i, j)),
            scratch_shapes=[pltpu.VMEM((tm, tn), jnp.float32)],
        ),
        compiler_params=pltpu.CompilerParams(
            dimension_semantics=("parallel", "parallel", "arbitrary"),
            vmem_limit_bytes=_VMEM_LIMIT,
        ),
    )(*args)


# ---------------------------------------------------------------------------
# Flash attention (online softmax), head-major input, lane-dense output.
# qkv: (B, 3, H, S, dk)  ->  output (B, S, H*dk)
# 1/sqrt(dk) is already folded into the Q projection weights.
# ---------------------------------------------------------------------------
def _flash_attn_kernel(q_ref, k_ref, v_ref, *rest, causal, has_mask):
    if has_mask:
        mask_ref, o_ref, m_scr, l_scr, acc_scr, q_scr = rest
    else:
        mask_ref = None
        o_ref, m_scr, l_scr, acc_scr, q_scr = rest

    kv_i = pl.program_id(3)

    @pl.when(kv_i == 0)
    def _init():
        m_scr[...] = jnp.full_like(m_scr, _NEG_INF)
        l_scr[...] = jnp.zeros_like(l_scr)
        acc_scr[...] = jnp.zeros_like(acc_scr)
        # q arrives head-major (hg, tq, dk); cast to bf16 ONCE per q tile.
        q_scr[...] = q_ref[...].astype(jnp.bfloat16)

    k = k_ref[...].astype(jnp.bfloat16)                      # (hg, tkv, dk)
    # scores (hg, tq, tkv); bf16 MXU operands, f32 accumulation.
    s = jnp.einsum("hqd,hkd->hqk", q_scr[...], k,
                   preferred_element_type=jnp.float32)

    if has_mask:
        s = s + mask_ref[...][None, :, :]                    # additive padding mask

    if causal:
        tq, tkv = s.shape[1], s.shape[2]
        row = pl.program_id(2) * tq + lax.broadcasted_iota(jnp.int32, (tq, tkv), 0)
        col = kv_i * tkv + lax.broadcasted_iota(jnp.int32, (tq, tkv), 1)
        s = jnp.where((col > row)[None, :, :], _NEG_INF, s)

    # online softmax with deferred normalization (all stats in f32)
    m_prev = m_scr[...]
    m_new = jnp.maximum(m_prev, jnp.max(s, axis=-1, keepdims=True))
    alpha = jnp.exp(m_prev - m_new)
    p = jnp.exp(s - m_new)
    l_scr[...] = alpha * l_scr[...] + jnp.sum(p, axis=-1, keepdims=True)
    acc_scr[...] = alpha * acc_scr[...] + jnp.einsum(
        "hqk,hkd->hqd", p.astype(jnp.bfloat16), v_ref[...].astype(jnp.bfloat16),
        preferred_element_type=jnp.float32,
    )
    m_scr[...] = m_new

    @pl.when(kv_i == pl.num_programs(3) - 1)
    def _finalize():
        inv_l = pl.reciprocal(l_scr[...], approx=True)        # EUP, ~free
        out = acc_scr[...] * inv_l                            # (hg, tq, dk)
        # lane-dense (tq, hg*dk) store; one relayout per output tile, not per kv step
        out = jnp.swapaxes(out, 0, 1)                         # (tq, hg, dk)
        o_ref[...] = out.reshape(o_ref.shape).astype(o_ref.dtype)


def pallas_flash_attention(qkv, mask_add=None, *, causal=False, tq=256, tkv=512):
    """qkv: (B, 3, H, S, dk) head-major; mask_add: (B, 1, S) additive or None.
    Returns (B, S, H*dk) — combine-heads is already done (lane-dense)."""
    B, three, H, S, dk = qkv.shape
    assert three == 3
    E = H * dk

    # head group: smallest divisor of H whose output block is >=256 lanes;
    # fall back to all heads (full-E block), which is always lane-legal.
    hg = H
    for g in range(1, H + 1):
        if H % g == 0 and g * dk >= 256:
            hg = g
            break

    tq = _pick_tile(S, tq, 16)
    tkv = _pick_tile(S, tkv, 128)
    grid = (B, H // hg, S // tq, S // tkv)
    has_mask = mask_add is not None
    kernel = functools.partial(_flash_attn_kernel, causal=causal, has_mask=has_mask)

    in_specs = [
        pl.BlockSpec((None, None, hg, tq, dk), lambda b, h, qi, ki: (b, 0, h, qi, 0)),
        pl.BlockSpec((None, None, hg, tkv, dk), lambda b, h, qi, ki: (b, 1, h, ki, 0)),
        pl.BlockSpec((None, None, hg, tkv, dk), lambda b, h, qi, ki: (b, 2, h, ki, 0)),
    ]
    args = [qkv, qkv, qkv]
    if has_mask:
        in_specs.append(pl.BlockSpec((None, 1, tkv), lambda b, h, qi, ki: (b, 0, ki)))
        args.append(mask_add)

    return pl.pallas_call(
        kernel,
        out_shape=jax.ShapeDtypeStruct((B, S, E), qkv.dtype),
        grid_spec=pltpu.PrefetchScalarGridSpec(
            num_scalar_prefetch=0,
            grid=grid,
            in_specs=in_specs,
            out_specs=pl.BlockSpec((None, tq, hg * dk),
                                   lambda b, h, qi, ki: (b, qi, h)),
            scratch_shapes=[
                pltpu.VMEM((hg, tq, 1), jnp.float32),    # running max
                pltpu.VMEM((hg, tq, 1), jnp.float32),    # running sum
                pltpu.VMEM((hg, tq, dk), jnp.float32),   # output accumulator
                pltpu.VMEM((hg, tq, dk), jnp.bfloat16),  # staged bf16 q tile
            ],
        ),
        compiler_params=pltpu.CompilerParams(
            dimension_semantics=("parallel", "parallel", "parallel", "arbitrary"),
            vmem_limit_bytes=_VMEM_LIMIT,
        ),
    )(*args)


# ---------------------------------------------------------------------------
# Parameters + full EncoderLayer forward
# ---------------------------------------------------------------------------
def init_encoder_layer_params(key, embed_dim, num_heads, d_ff):
    ks = jax.random.split(key, 14)
    dk = embed_dim // num_heads

    def lin(kw, kb, fan_in, fan_out):
        # weights kept once in (in, out) layout -> no per-call transpose
        w = jax.random.normal(kw, (fan_in, fan_out), jnp.float32) / math.sqrt(fan_in)
        b = jax.random.normal(kb, (fan_out,), jnp.float32) * 0.01
        return w, b

    wq, bq = lin(ks[0], ks[1], embed_dim, embed_dim)
    wk, bk = lin(ks[2], ks[3], embed_dim, embed_dim)
    wv, bv = lin(ks[4], ks[5], embed_dim, embed_dim)
    wo, bo = lin(ks[6], ks[7], embed_dim, embed_dim)
    w1, b1 = lin(ks[8], ks[9], embed_dim, d_ff)
    w2, b2 = lin(ks[10], ks[11], d_ff, embed_dim)

    # fold the attention 1/sqrt(dk) score scale into the Q projection
    # (exact reparameterization of the original module's forward pass)
    scale = 1.0 / math.sqrt(dk)
    wq = wq * scale
    bq = bq * scale

    ln1_g = 1.0 + 0.1 * jax.random.normal(ks[12], (embed_dim,), jnp.float32)
    ln2_g = 1.0 + 0.1 * jax.random.normal(ks[13], (embed_dim,), jnp.float32)

    bf16 = jnp.bfloat16
    return {
        "num_heads": num_heads,
        # fused QKV: one (E, 3E) matmul reads x from HBM once instead of 3x;
        # weights stored bf16 (MXU-native, half the weight DMA traffic)
        "w_qkv": jnp.concatenate([wq, wk, wv], axis=1).astype(bf16),
        "b_qkv": jnp.concatenate([bq, bk, bv], axis=0),
        "w_o": wo.astype(bf16), "b_o": bo,
        "ln1_g": ln1_g, "ln1_b": 0.1 * jnp.ones((embed_dim,), jnp.float32),
        "w1": w1.astype(bf16), "b1": b1,
        "w2": w2.astype(bf16), "b2": b2,
        "ln2_g": ln2_g, "ln2_b": -0.1 * jnp.ones((embed_dim,), jnp.float32),
    }


def encoder_layer_forward(params, x, padding_mask=None):
    B, S, E = x.shape
    H = params["num_heads"]
    dk = E // H
    x2 = x.reshape(B * S, E)

    # --- multi-head self-attention ---
    qkv = pallas_linear(x2, params["w_qkv"], params["b_qkv"])       # (B*S, 3E)
    # single HBM-level relayout to head-major (paid once per layer) so the
    # attention kernel never transposes q/k/v inside its kv inner loop
    qkv = qkv.reshape(B, S, 3, H, dk).transpose(0, 2, 3, 1, 4)      # (B, 3, H, S, dk)

    if padding_mask is None:
        mask_add = None                                             # specialized kernel
    else:
        pm = jnp.asarray(padding_mask).reshape(B, 1, S)
        mask_add = jnp.where(pm == 0, _NEG_INF, 0.0).astype(jnp.float32)

    attn = pallas_flash_attention(qkv, mask_add, causal=False)      # (B, S, E) lane-dense
    attn2 = attn.reshape(B * S, E)                                  # combine heads: free view

    # o-projection with fused residual-add + LayerNorm (dropout p=0 -> identity)
    h = pallas_linear(attn2, params["w_o"], params["b_o"],
                      residual=x2, gamma=params["ln1_g"], beta=params["ln1_b"])

    # --- position-wise feed-forward ---
    ff = pallas_linear(h, params["w1"], params["b1"], activation="relu")
    out = pallas_linear(ff, params["w2"], params["b2"],
                        residual=h, gamma=params["ln2_g"], beta=params["ln2_b"])
    return out.reshape(B, S, E)


# ---------------------------------------------------------------------------
# Pure-JAX f32 reference (uses the same stored weights; the 1/sqrt(dk) scale
# is already folded into the Q weight columns, so no extra score scaling here)
# ---------------------------------------------------------------------------
def reference_encoder_layer(params, x, padding_mask=None):
    B, S, E = x.shape
    H = params["num_heads"]
    dk = E // H
    f32 = jnp.float32

    qkv = x @ params["w_qkv"].astype(f32) + params["b_qkv"]
    q, k, v = jnp.split(qkv, 3, axis=-1)

    def split_heads(p):
        return p.reshape(B, S, H, dk).transpose(0, 2, 1, 3)

    q, k, v = split_heads(q), split_heads(k), split_heads(v)
    s = jnp.einsum("bhqd,bhkd->bhqk", q, k)          # scale pre-folded into Wq
    if padding_mask is not None:
        pm = jnp.asarray(padding_mask).reshape(B, 1, 1, S)
        s = s + jnp.where(pm == 0, _NEG_INF, 0.0)
    p = jax.nn.softmax(s, axis=-1)
    o = jnp.einsum("bhqk,bhkd->bhqd", p, v)
    o = o.transpose(0, 2, 1, 3).reshape(B, S, E)
    o = o @ params["w_o"].astype(f32) + params["b_o"]

    def ln(y, g, b):
        mu = y.mean(-1, keepdims=True)
        var = ((y - mu) ** 2).mean(-1, keepdims=True)
        return (y - mu) / jnp.sqrt(var + _LN_EPS) * g + b

    h = ln(x + o, params["ln1_g"], params["ln1_b"])
    ff = jnp.maximum(h @ params["w1"].astype(f32) + params["b1"], 0.0)
    ff = ff @ params["w2"].astype(f32) + params["b2"]
    return ln(h + ff, params["ln2_g"], params["ln2_b"])


if __name__ == "__main__":
    B, S, E, H, D_FF = 2, 8, 32, 4, 64

    key = jax.random.PRNGKey(0)
    kp, kx = jax.random.split(key)
    params = init_encoder_layer_params(kp, E, H, D_FF)
    x = jax.random.normal(kx, (B, S, E), jnp.float32)

    # padding mask: last two key positions of batch element 1 are padding
    padding_mask = jnp.ones((B, S), jnp.int32).at[1, -2:].set(0)

    out = encoder_layer_forward(params, x, padding_mask=padding_mask)
    out = jax.block_until_ready(out)
    assert out.shape == (B, S, E)
    ref = reference_encoder_layer(params, x, padding_mask=padding_mask)
    err = float(jnp.max(jnp.abs(out - ref)))
    # bf16 MXU operands + approx reciprocal => ~1e-2-level deviation from f32 reference
    assert err < 5e-2, f"mismatch vs reference (masked): {err:.3e}"

    # also exercise the mask-free (specialized) attention path
    out2 = jax.block_until_ready(encoder_layer_forward(params, x))
    ref2 = reference_encoder_layer(params, x)
    err2 = float(jnp.max(jnp.abs(out2 - ref2)))
    assert err2 < 5e-2, f"mismatch vs reference (no mask): {err2:.3e}"

    print("KERNEL_OK")
</pallas_src>

<mosaic_0001>
module attributes {stable_mosaic.version = 11 : i64} {
  func.func @_linear_kernel(%arg0: i32, %arg1: i32, %arg2: i32, %arg3: memref<16x32xf32, #tpu.memory_space<vmem>>, %arg4: memref<32x96xbf16, #tpu.memory_space<vmem>>, %arg5: memref<1x96xf32, #tpu.memory_space<vmem>>, %arg6: memref<16x96xf32, #tpu.memory_space<vmem>>, %arg7: memref<16x96xf32, #tpu.memory_space<vmem>>) attributes {dimension_semantics = [#tpu.dimension_semantics<parallel>, #tpu.dimension_semantics<parallel>, #tpu.dimension_semantics<arbitrary>], iteration_bounds = array<i64: 1, 1, 1>, scalar_prefetch = 0 : i64, scratch_operands = 1 : i64, tpu.core_type = #tpu.core_type<tc>, window_params = [{transform_indices = @transform_0, window_bounds = array<i64: 16, 32>}, {transform_indices = @transform_1, window_bounds = array<i64: 32, 96>}, {transform_indices = @transform_2, window_bounds = array<i64: 1, 96>}, {transform_indices = @transform_3, window_bounds = array<i64: 16, 96>}]} {
    %c0_i32 = arith.constant 0 : i32
    %0 = arith.cmpi eq, %arg2, %c0_i32 : i32
    %1 = arith.extui %0 : i1 to i32
    %c0_i32_0 = arith.constant 0 : i32
    %2 = arith.cmpi ne, %1, %c0_i32_0 : i32
    scf.if %2 {
      %cst_10 = arith.constant 0.000000e+00 : f32
      %13 = vector.broadcast %cst_10 : f32 to vector<16x96xf32>
      %c0_11 = arith.constant 0 : index
      %c0_12 = arith.constant 0 : index
      %14 = vector.load %arg7[%c0_11, %c0_12] : memref<16x96xf32, #tpu.memory_space<vmem>>, vector<16x96xf32>
      tpu.vector_store %arg7[%c0_11, %c0_12], %13 {strides = array<i32>} : memref<16x96xf32, #tpu.memory_space<vmem>>, vector<16x96xf32>,
    } else {
    }
    %c0 = arith.constant 0 : index
    %c0_1 = arith.constant 0 : index
    %3 = vector.load %arg7[%c0, %c0_1] : memref<16x96xf32, #tpu.memory_space<vmem>>, vector<16x96xf32>
    %c0_2 = arith.constant 0 : index
    %c0_3 = arith.constant 0 : index
    %4 = vector.load %arg3[%c0_2, %c0_3] : memref<16x32xf32, #tpu.memory_space<vmem>>, vector<16x32xf32>
    %5 = arith.truncf %4 : vector<16x32xf32> to vector<16x32xbf16>
    %c0_4 = arith.constant 0 : index
    %c0_5 = arith.constant 0 : index
    %6 = vector.load %arg4[%c0_4, %c0_5] : memref<32x96xbf16, #tpu.memory_space<vmem>>, vector<32x96xbf16>
    %cst = arith.constant dense<0.000000e+00> : vector<16x96xf32>
    %7 = tpu.matmul %5, %6, %cst {dimension_numbers = #tpu.dot_dimension_numbers<[1], [0], [0], [1], [0, 0, 1, 1], [], []>} : vector<16x32xbf16>, vector<32x96xbf16>, vector<16x96xf32> -> vector<16x96xf32>
    %8 = arith.addf %3, %7 : vector<16x96xf32>
    %c0_6 = arith.constant 0 : index
    %c0_7 = arith.constant 0 : index
    %9 = vector.load %arg7[%c0_6, %c0_7] : memref<16x96xf32, #tpu.memory_space<vmem>>, vector<16x96xf32>
    tpu.vector_store %arg7[%c0_6, %c0_7], %8 {strides = array<i32>} : memref<16x96xf32, #tpu.memory_space<vmem>>, vector<16x96xf32>,
    %c0_i32_8 = arith.constant 0 : i32
    %10 = arith.cmpi eq, %arg2, %c0_i32_8 : i32
    %11 = arith.extui %10 : i1 to i32
    %c0_i32_9 = arith.constant 0 : i32
    %12 = arith.cmpi ne, %11, %c0_i32_9 : i32
    scf.if %12 {
      %c0_10 = arith.constant 0 : index
      %c0_11 = arith.constant 0 : index
      %13 = vector.load %arg7[%c0_10, %c0_11] : memref<16x96xf32, #tpu.memory_space<vmem>>, vector<16x96xf32>
      %c0_12 = arith.constant 0 : index
      %c0_13 = arith.constant 0 : index
      %14 = vector.load %arg5[%c0_12, %c0_13] : memref<1x96xf32, #tpu.memory_space<vmem>>, vector<1x96xf32>
      %15 = vector.broadcast %14 : vector<1x96xf32> to vector<16x96xf32>
      %16 = arith.addf %13, %15 : vector<16x96xf32>
      %c0_14 = arith.constant 0 : index
      %c0_15 = arith.constant 0 : index
      %17 = vector.load %arg6[%c0_14, %c0_15] : memref<16x96xf32, #tpu.memory_space<vmem>>, vector<16x96xf32>
      tpu.vector_store %arg6[%c0_14, %c0_15], %16 {strides = array<i32>} : memref<16x96xf32, #tpu.memory_space<vmem>>, vector<16x96xf32>,
    } else {
    }
    return
  }
  func.func @transform_0(%arg0: i32, %arg1: i32, %arg2: i32) -> (i32, i32) {
    %c0_i32 = arith.constant 0 : i32
    return %arg0, %arg2 : i32, i32
  }
  func.func @transform_1(%arg0: i32, %arg1: i32, %arg2: i32) -> (i32, i32) {
    %c0_i32 = arith.constant 0 : i32
    return %arg2, %arg1 : i32, i32
  }
  func.func @transform_2(%arg0: i32, %arg1: i32, %arg2: i32) -> (i32, i32) {
    %c0_i32 = arith.constant 0 : i32
    %c0_i32_0 = arith.constant 0 : i32
    return %c0_i32, %arg1 : i32, i32
  }
  func.func @transform_3(%arg0: i32, %arg1: i32, %arg2: i32) -> (i32, i32) {
    %c0_i32 = arith.constant 0 : i32
    return %arg0, %arg1 : i32, i32
  }
}

</mosaic_0001>

<bundles_post_ra>
// kernel: tpu_custom_call.1
= control target key start
LH: loop header
LB: loop body
LE: loop exit
PB: predicated region body
PF: predicated region fallthrough
CT: control target
= control target key end

     0   :  { %8 = vsyncpa [#allocation4], 0  ;;  %s334_s0 = inlined_call_operand.hbm [shape: f32[16,32], index: 0, kind: input, shape index: {}]   ;;  %s335_s1 = inlined_call_operand.hbm [shape: bf16[32,96], index: 1, kind: input, shape index: {}]   ;;  %s336_s2 = inlined_call_operand.vmem [shape: f32[1,96], index: 2, kind: input, shape index: {}]   ;;  %s337_s3 = inlined_call_operand.hbm [shape: f32[16,96], index: 3, kind: output, shape index: {}]  }
   0x1   :  { %9 = vsyncpa [#allocation7], 0 }
   0x2   :  { %10 = vsyncpa [#allocation5], 0  ;;  %s254_s12 = smov [#allocation3]   ;;  %s182_s16 = scalar_lea.hbm %s334_s0, 256 }
   0x3   :  { %s16_s13 = sshll.u32 %s254_s12, 4  ;;  %p183_p0 = scmp.ne.s32.totalorder %s334_s0, %s182_s16  ;;  %s17_s13 = int_to_ptr.vmem [resolvable:$true] %s16_s13 }
   0x4   :  { %p186_p1 = scmp.lt.u32.totalorder %s182_s16, %s334_s0 }
   0x6   :  { %p188_p2 = pnand %p186_p1, %p183_p0 }
   0x8   :  { %191 = shalt.err (!%p188_p2)
}
   0x9   :  { %s192_s21 = scalar_lea.vmem %s17_s13, 256  ;;  %p197_p4 = scmp.lt.s32.totalorder %s17_s13, %s17_s13 }
   0xa   :  { %p193_p3 = scmp.ne.s32.totalorder %s17_s13, %s192_s21  ;;  %p198_p5 = scmp.lt.s32.totalorder %s192_s21, %s192_s21 }
   0xc   :  { %p199_p6 = por %p198_p5, %p197_p4 }
   0xe   :  { %p200_p7 = pnand %p199_p6, %p193_p3 }
  0x10   :  { %203 = shalt.err (!%p200_p7)
}
  0x11   :  { %s255_s22 = smov 128   ;;  %s256_s23 = smov 8  }
  0x12   :  { %22 = dma.hbm_to_vmem [thread:$0]  %s334_s0, 256, %s17_s13, [#allocation4], %s255_s22, %s255_s22, %s256_s23  }
  0x13   :  { %s257_s26 = smov [#allocation6]   ;;  %s204_s30 = scalar_lea.hbm %s335_s1, 256 }
  0x14   :  { %s28_s27 = sshll.u32 %s257_s26, 4  ;;  %p205_p8 = scmp.ne.s32.totalorder %s335_s1, %s204_s30  ;;  %s29_s27 = int_to_ptr.vmem [resolvable:$true] %s28_s27 }
  0x15   :  { %p208_p9 = scmp.lt.u32.totalorder %s204_s30, %s335_s1 }
  0x17   :  { %p210_p10 = pnand %p208_p9, %p205_p8 }
  0x19   :  { %213 = shalt.err (!%p210_p10)
}
  0x1a   :  { %s214_s8 = scalar_lea.vmem %s29_s27, 256  ;;  %p219_p12 = scmp.lt.s32.totalorder %s29_s27, %s29_s27 }
  0x1b   :  { %p215_p11 = scmp.ne.s32.totalorder %s29_s27, %s214_s8  ;;  %p220_p13 = scmp.lt.s32.totalorder %s214_s8, %s214_s8 }
  0x1d   :  { %p221_p0 = por %p220_p13, %p219_p12 }
  0x1f   :  { %p222_p1 = pnand %p221_p0, %p215_p11 }
  0x21   :  { %225 = shalt.err (!%p222_p1)
}
  0x22   :  { %s258_s0 = smov 64   ;;  %s259_s9 = smov 4  }
  0x23   :  { %34 = dma.hbm_to_vmem [thread:$0]  %s335_s1, 256, %s29_s27, [#allocation7], %s258_s0, %s258_s0, %s259_s9  }
  0x24   :  { %248 = dma.done.wait [#allocation4], 256  }
  0x25   :  { %249 = vsyncadd [#allocation4], 4294967040 }
  0x26   :  { %250 = dma.done.wait [#allocation7], 256  }
  0x27   :  { %251 = vsyncadd [#allocation7], 4294967040  ;;  %vm48_vm0 = vcmask 785408   ;;  %v260_v0 = vmov 0.0   ;;  %vm261_vm1 = vmmov 0   ;;  %v180_v1 = vld [vmem:[#allocation6] sm:$0xff]  }
  0x28   :  { %49 = vst.msk [vmem:[#allocation2] sm:$0xff] %vm48_vm0, %v260_v0  ;;  %50 = vst.msk [vmem:[#allocation2 + $0x8] sm:$0xff] %vm48_vm0, %v260_v0  ;;  %163 = vmatprep.subr.bf16.mxu0 %v260_v0  ;;  %167 = vmatprep.mubr.msk.bf16.mxu0 %vm261_vm1, %v260_v0  ;;  %v181_v2 = vld [vmem:[#allocation6 + $0x8] sm:$0xff]   ;;  %v53_v3 = vld [vmem:[#allocation3] sm:$0xff]  ;;  %vm72_vm2 = vcmask 261120   ;;  %s262_s13 = smov [#allocation8]  }
  0x29   :  { %164 = vmatpush3.bf16.msra.mxu0 %v180_v1  ;;  %v54_v4 = vld [vmem:[#allocation3 + $0x8] sm:$0xff]  ;;  %v159_v14 = vld [vmem:[%s336_s2] ss:$0 sm:$0xff]  ;;  %s143_s14 = sshll.u32 %s262_s13, 4  ;;  %s144_s14 = int_to_ptr.vmem [resolvable:$true] %s143_s14 }
  0x2a   :  { %165 = vmatprep.subr.bf16.mxu0 %v260_v0  ;;  %v55_v5 = vpack.c.bf16 %v54_v4, %v53_v3  ;;  %s226_s15 = scalar_lea.vmem %s144_s14, 256  ;;  %p231_p3 = scmp.lt.s32.totalorder %s144_s14, %s144_s14 }
  0x2b   :  { %p227_p2 = scmp.ne.s32.totalorder %s144_s14, %s226_s15  ;;  %p232_p4 = scmp.lt.s32.totalorder %s226_s15, %s226_s15 }
  0x2d   :  { %166 = vmatpush3.bf16.msra.mxu0 %v181_v2  ;;  %p233_p5 = por %p232_p4, %p231_p3 }
  0x2f   :  { %v51_v6 = vld [vmem:[#allocation2] sm:$0xff]  ;;  %v52_v8 = vld [vmem:[#allocation2 + $0x8] sm:$0xff]  ;;  %p234_p6 = pnand %p233_p5, %p227_p2 }
  0x30   :  { %168 = vmatmul.mubr.msk.bf16.vlgmr.msra.gmra.mrb[0].mxu0 %vm72_vm2, %v55_v5 }
 0x103   :  { %v110_v7 = vpop.f32.mrb[0].mxu0 }
 0x104   :  { %v117_v9 = vadd.f32 %v110_v7, %v51_v6  ;;  %v169_v10 = vpop.f32.mrb[1].mxu0 }
 0x105   :  { %v113_v11 = vpop.f32.mrb[2].mxu0 }
 0x106   :  { %120 = vst.msk [vmem:[#allocation2] sm:$0xff] %vm48_vm0, %v117_v9  ;;  %v118_v12 = vadd.f32 %v113_v11, %v52_v8  ;;  %v170_v13 = vpop.f32.mrb[3].mxu0 }
 0x108   :  { %121 = vst.msk [vmem:[#allocation2 + $0x8] sm:$0xff] %vm48_vm0, %v118_v12 }
 0x10d   :  { %v125_v15 = vld [vmem:[#allocation2] sm:$0xff] }
 0x10e   :  { %v134_v16 = vadd.f32 %v159_v14, %v125_v15 }
 0x10f   :  { %v126_v17 = vld [vmem:[#allocation2 + $0x8] sm:$0xff] }
 0x110   :  { %v135_v18 = vadd.f32 %v159_v14, %v126_v17  ;;  %136 = vst.msk [vmem:[#allocation8] sm:$0xff] %vm48_vm0, %v134_v16 }
 0x112   :  { %137 = vst.msk [vmem:[#allocation8 + $0x8] sm:$0xff] %vm48_vm0, %v135_v18 }
 0x113   :  { %237 = shalt.err (!%p234_p6)
}
 0x114   :  { %s238_s17 = scalar_lea.hbm %s337_s3, 256 }
 0x115   :  { %p239_p7 = scmp.ne.s32.totalorder %s337_s3, %s238_s17  ;;  %p242_p8 = scmp.lt.u32.totalorder %s238_s17, %s337_s3 }
 0x117   :  { %p244_p9 = pnand %p242_p8, %p239_p7 }
 0x119   :  { %247 = shalt.err (!%p244_p9)
}
 0x11a   :  { %149 = dma.vmem_to_hbm [thread:$0]  %s144_s14, 256, %s337_s3, [#allocation5], %s255_s22, %s255_s22, %s256_s23  }
 0x11b   :  { %252 = dma.done.wait [#allocation5], 256  }
 0x11c   :  { %253 = vsyncadd [#allocation5], 4294967040 }
 0x11d   :  { %153 = vsyncpa [#allocation4], 1 }
 0x11e   :  { %154 = vsyncpa [#allocation7], 1 }
 0x11f   :  { %155 = vsyncpa [#allocation5], 1 }

</bundles_post_ra>
